<compile_context>
chip_gen: v7x
topology: tpu7x:2x2x1
jax: 0.10.0
libtpu: 0.0.40
codegen_flags: <defaults>
</compile_context>

<pallas_src>
import functools

import jax
import jax.numpy as jnp
from jax.experimental import pallas as pl
from jax.experimental.pallas import tpu as pltpu


def _conv2d_kernel(x_ref, w_ref, o_ref, *, KH, KW, W, HW):
    """Valid conv, stride 1, no bias. One image per grid step.

    x_ref: (1, Cin, H*W)       VMEM, lane-dense spatial (row-major h*W + w)
    w_ref: (KH*KW, Cout, Cin)  VMEM, resident across the whole grid
    o_ref: (1, Cout, H*W)      VMEM, padded output (wrapper crops to OHxOW)
    """
    x = x_ref[0]                                   # (Cin, HW), lane-dense
    cout = w_ref.shape[1]
    acc = jnp.zeros((cout, HW), jnp.float32)       # 2 lane-dense f32 vregs

    for i in range(KH):                            # KH*KW = 9 static taps
        for j in range(KW):
            off = i * W + j
            # Left-roll so that xt[:, h*W + w] = x[:, (h+i)*W + (w+j)].
            # Valid output positions (h < OH, w < OW) never read wrapped
            # lanes; the wrapper crops everything else.
            xt = x if off == 0 else pltpu.roll(x, HW - off, axis=1)
            acc += jnp.dot(w_ref[i * KW + j], xt,
                           preferred_element_type=jnp.float32)

    o_ref[0] = acc.astype(o_ref.dtype)


def conv2d_pallas(x_nchw, w_oihw):
    """Forward of TorchCNN. x_nchw: (N, Cin, H, W); w_oihw: (Cout, Cin, KH, KW)."""
    N, Cin, H, W = x_nchw.shape
    Cout, Cin_w, KH, KW = w_oihw.shape
    assert Cin == Cin_w
    OH, OW = H - KH + 1, W - KW + 1
    HW = H * W

    # Free, contiguous reshape (no HBM transpose): spatial becomes lane-dense.
    x_flat = x_nchw.reshape(N, Cin, HW)
    # Tiny one-time weight re-layout: per-tap (Cout, Cin) slabs, leading-axis
    # indexed in the kernel. w_taps[i*KW + j, co, ci] == w_oihw[co, ci, i, j].
    w_taps = jnp.transpose(w_oihw, (2, 3, 0, 1)).reshape(KH * KW, Cout, Cin)

    kernel = functools.partial(_conv2d_kernel, KH=KH, KW=KW, W=W, HW=HW)

    out_pad = pl.pallas_call(
        kernel,
        out_shape=jax.ShapeDtypeStruct((N, Cout, HW), x_nchw.dtype),
        grid=(N,),
        in_specs=[
            pl.BlockSpec((1, Cin, HW), lambda n: (n, 0, 0)),
            # Constant index_map -> weight tile resident, DMA'd once.
            pl.BlockSpec((KH * KW, Cout, Cin), lambda n: (0, 0, 0)),
        ],
        out_specs=pl.BlockSpec((1, Cout, HW), lambda n: (n, 0, 0)),
        compiler_params=pltpu.CompilerParams(
            dimension_semantics=("parallel",)),
    )(x_flat, w_taps)

    # Free reshape back to (N, Cout, H, W), then crop the valid window once.
    return out_pad.reshape(N, Cout, H, W)[:, :, :OH, :OW]


if __name__ == "__main__":
    # Small shapes consistent with the module: batch=2, in_channel=4,
    # spatial=16x16, out_channel=8, kernel_size=3.
    N, Cin, H, W = 2, 4, 16, 16
    Cout, K = 8, 3

    key = jax.random.PRNGKey(0)
    kx, kw = jax.random.split(key)
    x = jax.random.normal(kx, (N, Cin, H, W), dtype=jnp.float32)
    # Deterministic weights (shape matches nn.Conv2d(in, out, k, bias=False).weight).
    w = jax.random.normal(kw, (Cout, Cin, K, K), dtype=jnp.float32) * 0.1

    out = conv2d_pallas(x, w)
    out = jax.block_until_ready(out)

    # Reference: XLA conv with the same semantics as torch Conv2d (bias=False).
    ref = jax.lax.conv_general_dilated(
        x, w, window_strides=(1, 1), padding="VALID",
        dimension_numbers=("NCHW", "OIHW", "NCHW"))
    assert out.shape == (N, Cout, H - K + 1, W - K + 1)
    # All-f32 path: tight tolerance (per review feedback).
    assert jnp.allclose(out, ref, atol=1e-5, rtol=1e-5)

    print("KERNEL_OK")
</pallas_src>

<mosaic_0001>
module attributes {stable_mosaic.version = 11 : i64} {
  func.func @_conv2d_kernel(%arg0: i32, %arg1: memref<1x4x256xf32, #tpu.memory_space<vmem>>, %arg2: memref<9x8x4xf32, #tpu.memory_space<vmem>>, %arg3: memref<1x8x256xf32, #tpu.memory_space<vmem>>) attributes {dimension_semantics = [#tpu.dimension_semantics<parallel>], iteration_bounds = array<i64: 2>, scalar_prefetch = 0 : i64, scratch_operands = 0 : i64, tpu.core_type = #tpu.core_type<tc>, window_params = [{transform_indices = @transform_0, window_bounds = array<i64: 1, 4, 256>}, {pipeline_mode = #tpu.pipeline_mode<synchronous>, transform_indices = @transform_1, window_bounds = array<i64: 9, 8, 4>}, {transform_indices = @transform_2, window_bounds = array<i64: 1, 8, 256>}]} {
    %c0 = arith.constant 0 : index
    %c0_0 = arith.constant 0 : index
    %c0_1 = arith.constant 0 : index
    %0 = vector.load %arg1[%c0, %c0_0, %c0_1] : memref<1x4x256xf32, #tpu.memory_space<vmem>>, vector<1x4x256xf32>
    %1 = vector.shape_cast %0 : vector<1x4x256xf32> to vector<4x256xf32>
    %cst = arith.constant 0.000000e+00 : f32
    %2 = vector.broadcast %cst : f32 to vector<8x256xf32>
    %c0_2 = arith.constant 0 : index
    %c0_3 = arith.constant 0 : index
    %c0_4 = arith.constant 0 : index
    %3 = vector.load %arg2[%c0_2, %c0_3, %c0_4] : memref<9x8x4xf32, #tpu.memory_space<vmem>>, vector<1x8x4xf32>
    %4 = vector.shape_cast %3 : vector<1x8x4xf32> to vector<8x4xf32>
    %cst_5 = arith.constant dense<0.000000e+00> : vector<8x256xf32>
    %5 = tpu.matmul %4, %1, %cst_5 {dimension_numbers = #tpu.dot_dimension_numbers<[1], [0], [0], [1], [0, 0, 1, 1], [], []>} : vector<8x4xf32>, vector<4x256xf32>, vector<8x256xf32> -> vector<8x256xf32>
    %6 = arith.addf %2, %5 : vector<8x256xf32>
    %c255_i32 = arith.constant 255 : i32
    %7 = tpu.dynamic_rotate %1 by %c255_i32 dim 1 : vector<4x256xf32>, i32 -> vector<4x256xf32>
    %c1 = arith.constant 1 : index
    %c0_6 = arith.constant 0 : index
    %c0_7 = arith.constant 0 : index
    %8 = vector.load %arg2[%c1, %c0_6, %c0_7] : memref<9x8x4xf32, #tpu.memory_space<vmem>>, vector<1x8x4xf32>
    %9 = vector.shape_cast %8 : vector<1x8x4xf32> to vector<8x4xf32>
    %cst_8 = arith.constant dense<0.000000e+00> : vector<8x256xf32>
    %10 = tpu.matmul %9, %7, %cst_8 {dimension_numbers = #tpu.dot_dimension_numbers<[1], [0], [0], [1], [0, 0, 1, 1], [], []>} : vector<8x4xf32>, vector<4x256xf32>, vector<8x256xf32> -> vector<8x256xf32>
    %11 = arith.addf %6, %10 : vector<8x256xf32>
    %c254_i32 = arith.constant 254 : i32
    %12 = tpu.dynamic_rotate %1 by %c254_i32 dim 1 : vector<4x256xf32>, i32 -> vector<4x256xf32>
    %c2 = arith.constant 2 : index
    %c0_9 = arith.constant 0 : index
    %c0_10 = arith.constant 0 : index
    %13 = vector.load %arg2[%c2, %c0_9, %c0_10] : memref<9x8x4xf32, #tpu.memory_space<vmem>>, vector<1x8x4xf32>
    %14 = vector.shape_cast %13 : vector<1x8x4xf32> to vector<8x4xf32>
    %cst_11 = arith.constant dense<0.000000e+00> : vector<8x256xf32>
    %15 = tpu.matmul %14, %12, %cst_11 {dimension_numbers = #tpu.dot_dimension_numbers<[1], [0], [0], [1], [0, 0, 1, 1], [], []>} : vector<8x4xf32>, vector<4x256xf32>, vector<8x256xf32> -> vector<8x256xf32>
    %16 = arith.addf %11, %15 : vector<8x256xf32>
    %c240_i32 = arith.constant 240 : i32
    %17 = tpu.dynamic_rotate %1 by %c240_i32 dim 1 : vector<4x256xf32>, i32 -> vector<4x256xf32>
    %c3 = arith.constant 3 : index
    %c0_12 = arith.constant 0 : index
    %c0_13 = arith.constant 0 : index
    %18 = vector.load %arg2[%c3, %c0_12, %c0_13] : memref<9x8x4xf32, #tpu.memory_space<vmem>>, vector<1x8x4xf32>
    %19 = vector.shape_cast %18 : vector<1x8x4xf32> to vector<8x4xf32>
    %cst_14 = arith.constant dense<0.000000e+00> : vector<8x256xf32>
    %20 = tpu.matmul %19, %17, %cst_14 {dimension_numbers = #tpu.dot_dimension_numbers<[1], [0], [0], [1], [0, 0, 1, 1], [], []>} : vector<8x4xf32>, vector<4x256xf32>, vector<8x256xf32> -> vector<8x256xf32>
    %21 = arith.addf %16, %20 : vector<8x256xf32>
    %c239_i32 = arith.constant 239 : i32
    %22 = tpu.dynamic_rotate %1 by %c239_i32 dim 1 : vector<4x256xf32>, i32 -> vector<4x256xf32>
    %c4 = arith.constant 4 : index
    %c0_15 = arith.constant 0 : index
    %c0_16 = arith.constant 0 : index
    %23 = vector.load %arg2[%c4, %c0_15, %c0_16] : memref<9x8x4xf32, #tpu.memory_space<vmem>>, vector<1x8x4xf32>
    %24 = vector.shape_cast %23 : vector<1x8x4xf32> to vector<8x4xf32>
    %cst_17 = arith.constant dense<0.000000e+00> : vector<8x256xf32>
    %25 = tpu.matmul %24, %22, %cst_17 {dimension_numbers = #tpu.dot_dimension_numbers<[1], [0], [0], [1], [0, 0, 1, 1], [], []>} : vector<8x4xf32>, vector<4x256xf32>, vector<8x256xf32> -> vector<8x256xf32>
    %26 = arith.addf %21, %25 : vector<8x256xf32>
    %c238_i32 = arith.constant 238 : i32
    %27 = tpu.dynamic_rotate %1 by %c238_i32 dim 1 : vector<4x256xf32>, i32 -> vector<4x256xf32>
    %c5 = arith.constant 5 : index
    %c0_18 = arith.constant 0 : index
    %c0_19 = arith.constant 0 : index
    %28 = vector.load %arg2[%c5, %c0_18, %c0_19] : memref<9x8x4xf32, #tpu.memory_space<vmem>>, vector<1x8x4xf32>
    %29 = vector.shape_cast %28 : vector<1x8x4xf32> to vector<8x4xf32>
    %cst_20 = arith.constant dense<0.000000e+00> : vector<8x256xf32>
    %30 = tpu.matmul %29, %27, %cst_20 {dimension_numbers = #tpu.dot_dimension_numbers<[1], [0], [0], [1], [0, 0, 1, 1], [], []>} : vector<8x4xf32>, vector<4x256xf32>, vector<8x256xf32> -> vector<8x256xf32>
    %31 = arith.addf %26, %30 : vector<8x256xf32>
    %c224_i32 = arith.constant 224 : i32
    %32 = tpu.dynamic_rotate %1 by %c224_i32 dim 1 : vector<4x256xf32>, i32 -> vector<4x256xf32>
    %c6 = arith.constant 6 : index
    %c0_21 = arith.constant 0 : index
    %c0_22 = arith.constant 0 : index
    %33 = vector.load %arg2[%c6, %c0_21, %c0_22] : memref<9x8x4xf32, #tpu.memory_space<vmem>>, vector<1x8x4xf32>
    %34 = vector.shape_cast %33 : vector<1x8x4xf32> to vector<8x4xf32>
    %cst_23 = arith.constant dense<0.000000e+00> : vector<8x256xf32>
    %35 = tpu.matmul %34, %32, %cst_23 {dimension_numbers = #tpu.dot_dimension_numbers<[1], [0], [0], [1], [0, 0, 1, 1], [], []>} : vector<8x4xf32>, vector<4x256xf32>, vector<8x256xf32> -> vector<8x256xf32>
    %36 = arith.addf %31, %35 : vector<8x256xf32>
    %c223_i32 = arith.constant 223 : i32
    %37 = tpu.dynamic_rotate %1 by %c223_i32 dim 1 : vector<4x256xf32>, i32 -> vector<4x256xf32>
    %c7 = arith.constant 7 : index
    %c0_24 = arith.constant 0 : index
    %c0_25 = arith.constant 0 : index
    %38 = vector.load %arg2[%c7, %c0_24, %c0_25] : memref<9x8x4xf32, #tpu.memory_space<vmem>>, vector<1x8x4xf32>
    %39 = vector.shape_cast %38 : vector<1x8x4xf32> to vector<8x4xf32>
    %cst_26 = arith.constant dense<0.000000e+00> : vector<8x256xf32>
    %40 = tpu.matmul %39, %37, %cst_26 {dimension_numbers = #tpu.dot_dimension_numbers<[1], [0], [0], [1], [0, 0, 1, 1], [], []>} : vector<8x4xf32>, vector<4x256xf32>, vector<8x256xf32> -> vector<8x256xf32>
    %41 = arith.addf %36, %40 : vector<8x256xf32>
    %c222_i32 = arith.constant 222 : i32
    %42 = tpu.dynamic_rotate %1 by %c222_i32 dim 1 : vector<4x256xf32>, i32 -> vector<4x256xf32>
    %c8 = arith.constant 8 : index
    %c0_27 = arith.constant 0 : index
    %c0_28 = arith.constant 0 : index
    %43 = vector.load %arg2[%c8, %c0_27, %c0_28] : memref<9x8x4xf32, #tpu.memory_space<vmem>>, vector<1x8x4xf32>
    %44 = vector.shape_cast %43 : vector<1x8x4xf32> to vector<8x4xf32>
    %cst_29 = arith.constant dense<0.000000e+00> : vector<8x256xf32>
    %45 = tpu.matmul %44, %42, %cst_29 {dimension_numbers = #tpu.dot_dimension_numbers<[1], [0], [0], [1], [0, 0, 1, 1], [], []>} : vector<8x4xf32>, vector<4x256xf32>, vector<8x256xf32> -> vector<8x256xf32>
    %46 = arith.addf %41, %45 : vector<8x256xf32>
    %c0_30 = arith.constant 0 : index
    %c0_31 = arith.constant 0 : index
    %c0_32 = arith.constant 0 : index
    %47 = vector.load %arg3[%c0_30, %c0_31, %c0_32] : memref<1x8x256xf32, #tpu.memory_space<vmem>>, vector<1x8x256xf32>
    %48 = vector.shape_cast %47 : vector<1x8x256xf32> to vector<8x256xf32>
    %49 = vector.shape_cast %46 : vector<8x256xf32> to vector<1x8x256xf32>
    tpu.vector_store %arg3[%c0_30, %c0_31, %c0_32], %49 {strides = array<i32>} : memref<1x8x256xf32, #tpu.memory_space<vmem>>, vector<1x8x256xf32>,
    return
  }
  func.func @transform_0(%arg0: i32) -> (i32, i32, i32) {
    %c0_i32 = arith.constant 0 : i32
    %c0_i32_0 = arith.constant 0 : i32
    %c0_i32_1 = arith.constant 0 : i32
    return %arg0, %c0_i32, %c0_i32_0 : i32, i32, i32
  }
  func.func @transform_1(%arg0: i32) -> (i32, i32, i32) {
    %c0_i32 = arith.constant 0 : i32
    %c0_i32_0 = arith.constant 0 : i32
    %c0_i32_1 = arith.constant 0 : i32
    %c0_i32_2 = arith.constant 0 : i32
    return %c0_i32, %c0_i32_0, %c0_i32_1 : i32, i32, i32
  }
  func.func @transform_2(%arg0: i32) -> (i32, i32, i32) {
    %c0_i32 = arith.constant 0 : i32
    %c0_i32_0 = arith.constant 0 : i32
    %c0_i32_1 = arith.constant 0 : i32
    return %arg0, %c0_i32, %c0_i32_0 : i32, i32, i32
  }
}

</mosaic_0001>

<bundles_post_ra>
// kernel: tpu_custom_call.1
= control target key start
LH: loop header
LB: loop body
LE: loop exit
PB: predicated region body
PF: predicated region fallthrough
CT: control target
= control target key end

     0   :  { %7 = vsyncpa [#allocation3], 0  ;;  %s1407_s0 = inlined_call_operand.vmem [shape: f32[2,4,256], index: 0, kind: input, shape index: {}]   ;;  %s1408_s1 = inlined_call_operand.vmem [shape: f32[9,8,4], index: 1, kind: input, shape index: {}]   ;;  %s1409_s2 = inlined_call_operand.hbm [shape: f32[2,8,256], index: 2, kind: output, shape index: {}]  }
   0x1   :  { %9 = vsyncpa [#allocation3 + $0x1], 0  ;;  %s1234_s9 = smov 0   ;;  %s1236_s10 = smov 0  }
   0x2   :  { %s1238_s11 = smov 0   ;;  %s1240_s12 = smov 0  }
   0x3 LB: > { %s1255_s13 = sadd.s32 4294967295, %s1207_s12   ;;  %s1031_s14 = sadd.s32 4294967294, %s1207_s12   ;;  %s1207_s12 = sphi %s1240_s12, %s1415_s12   ;;  %s1203_s11 = sphi %s1238_s11, %s1414_s11   ;;  %s1199_s10 = sphi %s1236_s10, %s1413_s10   ;;  %s1195_s9 = sphi %s1234_s9, %s1412_s9  }
   0x4   : > { %s1259_s15 = sadd.s32 1, %s1207_s12   ;;  %s69_s16 = sadd.s32 1, %s1203_s11 }
   0x5   : > { %s66_s17 = ssub.s32 %s1207_s12, %s1259_s15  ;;  %p79_p0 = scmp.ne.s32.totalorder %s1203_s11, %s1199_s10 }
   0x6   : > { %p67_p1 = scmp.eq.s32.totalorder %s66_s17, 0  ;;  %p80_p2 = scmp.eq.s32.totalorder %s1255_s13, 1 }
   0x7   : > { %p85_p3 = scmp.ne.s32.totalorder %s1199_s10, %s1195_s9  ;;  %p86_p4 = scmp.eq.s32.totalorder %s1031_s14, 1 }
   0x8   : > { %s1270_s18 = scalar_select %p67_p1, %s1203_s11, %s69_s16  }
   0x9   : > { %p1272_p5 = por %p80_p2, %p79_p0  ;;  %p1276_p6 = por %p86_p4, %p85_p3 }
   0xa   : > { %p1034_p7 = scmp.ge.s32.totalorder %s1207_s12, 1  ;;  %p115_p8 = scmp.lt.s32.totalorder %s1207_s12, 3 }
   0xc   : > { %p116_p9 = pnand %p1034_p7, %p115_p8 }
   0xd   : > { %p137_p10 = scmp.lt.s32.totalorder (!%p116_p9), %s1255_s13, 1  ;;  %v1209_v0 = vmov (!%p116_p9), 0.0   ;;  %s1210_s26 = smov (!%p116_p9), 127   ;;  %v151_v3 = vlaneseq (!%p116_p9)  ;;  %vm162_vm2 = vcmask (!%p116_p9), 1043456   ;;  %vm158_vm3 = vcmask (!%p116_p9), 31744   ;;  %v1038_v13 = vld [vmem:[%s1408_s1 + $0x8] sm:$0xff] (!%p116_p9) }
   0xe   : > { %119 = sbr.rel (%p116_p9) target bundleno = 409 (0x199), region = 28  ;;  %233 = vmatprep.mubr.f32.mxu1 (!%p116_p9), %v1209_v0  ;;  %582 = vmatprep.mubr.f32.mxu0 (!%p116_p9), %v1209_v0  ;;  %s1211_s27 = smov (!%p116_p9), 111   ;;  %v1053_v14 = vld [vmem:[%s1408_s1 + $0x20] sm:$0xff] (!%p116_p9)  ;;  %v1057_v23 = vld [vmem:[%s1408_s1 + $0x28] sm:$0xff] (!%p116_p9)  ;;  %v1045_v32 = vld [vmem:[%s1408_s1 + $0x10] sm:$0xff] (!%p116_p9) }
   0xf   : > { %s1212_s28 = smov (!%p116_p9), 110   ;;  %s1213_s29 = smov (!%p116_p9), 96   ;;  %v1289_v4 = vand.u32 (!%p116_p9), 127, %v151_v3  ;;  %v143_v22 = vld [vmem:[%s1408_s1] sm:$0xff] (!%p116_p9)  ;;  %v1061_v33 = vld [vmem:[%s1408_s1 + $0x30] sm:$0xff] (!%p116_p9)  ;;  %v1049_v42 = vld [vmem:[%s1408_s1 + $0x18] sm:$0xff] (!%p116_p9) }
  0x10   : > { %s1214_s30 = smov (!%p116_p9), 126   ;;  %s1215_s3 = smov (!%p116_p9), 95   ;;  %v1065_v43 = vld [vmem:[%s1408_s1 + $0x38] sm:$0xff] (!%p116_p9)  ;;  %v1069_v45 = vld [vmem:[%s1408_s1 + $0x40] sm:$0xff] (!%p116_p9) }
  0x11   : > { %s1216_s4 = smov (!%p116_p9), 112   ;;  %s1217_s5 = smov (!%p116_p9), 94   ;;  %vm153_vm0 = vcmp.lt.s32.totalorder (!%p116_p9), %v1289_v4, 127  ;;  %vm504_vm1 = vcmp.lt.s32.totalorder (!%p116_p9), %v1289_v4, 111  ;;  %vm595_vm4 = vcmp.lt.s32.totalorder (!%p116_p9), %v1289_v4, 110  ;;  %vm686_vm5 = vcmp.lt.s32.totalorder (!%p116_p9), %v1289_v4, 96 }
  0x12   : > { %vm322_vm6 = vcmp.lt.s32.totalorder (!%p116_p9), %v1289_v4, 126  ;;  %vm777_vm7 = vcmp.lt.s32.totalorder (!%p116_p9), %v1289_v4, 95  ;;  %vm413_vm8 = vcmp.lt.s32.totalorder (!%p116_p9), %v1289_v4, 112  ;;  %vm868_vm9 = vcmp.lt.s32.totalorder (!%p116_p9), %v1289_v4, 94  ;;  %s1079_s7 = sshll.u32 (!%p116_p9), %s1255_s13, 8  ;;  %s1218_s23 = smov (!%p116_p9), [#allocation2]  }
  0x13   : > { %s1149_s24 = sshll.u32 (!%p116_p9), %s1218_s23, 4  ;;  %s1150_s24 = int_to_ptr.vmem [resolvable:$false] %s1149_s24 }
  0x15   : > { %s138_s21 = scalar_select %p137_p10, %s1255_s13, 1 }
  0x17   : > { %s1078_s22 = sshll.u32 %s138_s21, 3  ;;  %s1365_s21 = scalar_lea.hbm %s1409_s2, %s1079_s7 }
  0x18   : > { %s141_s25 = scalar_lea.vmem %s1407_s0, %s1078_s22 }
  0x19   : > { %v142_v1 = vld [vmem:[%s141_s25] sm:$0xff]  ;;  %s1151_s25 = scalar_lea.vmem %s1150_s24, 512 }
  0x1a   : > { %147 = vrot.lane.b32.xlu1 %v142_v1, %s1210_s26  ;;  %500 = vrot.lane.b32.xlu0 %v142_v1, %s1211_s27  ;;  %v145_v2 = vcombine.high %v142_v1, %v142_v1 }
  0x1e   : > { %149 = vrot.lane.b32.xlu1 %v145_v2, %s1210_s26  ;;  %502 = vrot.lane.b32.xlu0 %v145_v2, %s1211_s27 }
  0x22   : > { %593 = vrot.lane.b32.xlu1 %v145_v2, %s1212_s28  ;;  %591 = vrot.lane.b32.xlu0 %v142_v1, %s1212_s28 }
  0x26   : > { %684 = vrot.lane.b32.xlu1 %v145_v2, %s1213_s29  ;;  %682 = vrot.lane.b32.xlu0 %v142_v1, %s1213_s29 }
  0x2a   : > { %320 = vrot.lane.b32.xlu1 %v145_v2, %s1214_s30  ;;  %318 = vrot.lane.b32.xlu0 %v142_v1, %s1214_s30 }
  0x2e   : > { %775 = vrot.lane.b32.xlu1 %v145_v2, %s1215_s3  ;;  %773 = vrot.lane.b32.xlu0 %v142_v1, %s1215_s3 }
  0x32   : > { %411 = vrot.lane.b32.xlu1 %v145_v2, %s1216_s4  ;;  %409 = vrot.lane.b32.xlu0 %v142_v1, %s1216_s4 }
  0x36   : > { %866 = vrot.lane.b32.xlu1 %v145_v2, %s1217_s5  ;;  %864 = vrot.lane.b32.xlu0 %v142_v1, %s1217_s5  ;;  %s134_s5 = sand.u32 1, %s1199_s10  }
  0x37   : > { %s1035_s6 = sshll.u32 %s134_s5, 4  ;;  %s958_s22 = scalar_lea.sflag [#allocation3], %s134_s5 }
  0x38   : > { %s136_s8 = scalar_lea.vmem [#allocation2], %s1035_s6 }
  0x39   : > { %s972_s14 = sshll.u32 %s136_s8, 4  ;;  %s1367_s14 = int_to_ptr.vmem [resolvable:$true] %s972_s14 }
  0x3a   : > { %s1145_s13 = scalar_lea.vmem %s1367_s14, 256  ;;  %p1152_p0 = scmp.lt.s32.totalorder %s1367_s14, %s1150_s24 }
  0x3b   : > { %p1146_p11 = scmp.ne.s32.totalorder %s1367_s14, %s1145_s13  ;;  %p1153_p1 = scmp.lt.s32.totalorder %s1151_s25, %s1145_s13 }
  0x3d   : > { %p1147_p12 = pnand %p1146_p11, %p1272_p5  ;;  %p1154_p2 = por %p1153_p1, %p1152_p0 }
  0x3f   : > { %p1148_p13 = pneg %p1147_p12 }
  0x41   : > { %p1155_p3 = pnand %p1154_p2, %p1148_p13 }
  0x8c   : > { %v148_v5 = vpop.permute.xlu1 %147  ;;  %v501_v6 = vpop.permute.xlu0 %500 }
  0x90   : > { %v150_v7 = vpop.permute.xlu1 %149  ;;  %v503_v8 = vpop.permute.xlu0 %502 }
  0x91   : > { %v155_v9 = vsel %vm153_vm0, %v150_v7, %v148_v5  ;;  %v506_v10 = vsel %vm504_vm1, %v503_v8, %v501_v6  ;;  %v154_v11 = vsel %vm153_vm0, %v148_v5, %v150_v7  ;;  %v505_v12 = vsel %vm504_vm1, %v501_v6, %v503_v8 }
  0x92   : > { %1039 = vmatprep.subr.msk.mxu1 %vm162_vm2, %v155_v9  ;;  %1054 = vmatprep.subr.msk.mxu0 %vm162_vm2, %v506_v10 }
  0x93   : > { %1040 = vmatpush1.msk.msra.mxu1 %vm162_vm2, %v154_v11  ;;  %1055 = vmatpush1.msk.msra.mxu0 %vm162_vm2, %v505_v12 }
  0x94   : > { %1041 = vmatmul.mubr.msk.f32.vlgmr.msra.gmra.mrb[0].mxu1 %vm158_vm3, %v1038_v13  ;;  %v594_v15 = vpop.permute.xlu1 %593  ;;  %1056 = vmatmul.mubr.msk.f32.vlgmr.msra.gmra.mrb[0].mxu0 %vm158_vm3, %v1053_v14  ;;  %v592_v16 = vpop.permute.xlu0 %591 }
  0x95   : > { %v596_v17 = vsel %vm595_vm4, %v592_v16, %v594_v15  ;;  %v597_v18 = vsel %vm595_vm4, %v594_v15, %v592_v16  ;;  %1042 = vmatprep.subr.msk.mxu1 %vm162_vm2, %v145_v2  ;;  %311 = vmatprep.mubr.f32.mxu1 %v1209_v0 }
  0x96   : > { %1058 = vmatprep.subr.msk.mxu0 %vm162_vm2, %v597_v18  ;;  %1043 = vmatpush1.msk.msra.mxu1 %vm162_vm2, %v142_v1 }
  0x97   : > { %1059 = vmatpush1.msk.msra.mxu0 %vm162_vm2, %v596_v17  ;;  %673 = vmatprep.mubr.f32.mxu0 %v1209_v0 }
  0x98   : > { %v685_v19 = vpop.permute.xlu1 %684  ;;  %v683_v20 = vpop.permute.xlu0 %682 }
  0x99   : > { %v688_v21 = vsel %vm686_vm5, %v685_v19, %v683_v20  ;;  %v687_v24 = vsel %vm686_vm5, %v683_v20, %v685_v19 }
  0x9a   : > { %1062 = vmatprep.subr.msk.mxu0 %vm162_vm2, %v688_v21 }
  0x9c   : > { %1044 = vmatmul.mubr.msk.f32.vlgmr.msra.gmra.mrb[0].mxu1 %vm158_vm3, %v143_v22  ;;  %1060 = vmatmul.mubr.msk.f32.vlgmr.msra.gmra.mrb[0].mxu0 %vm158_vm3, %v1057_v23  ;;  %v321_v25 = vpop.permute.xlu1 %320  ;;  %v319_v26 = vpop.permute.xlu0 %318 }
  0x9d   : > { %1063 = vmatpush1.msk.msra.mxu0 %vm162_vm2, %v687_v24  ;;  %v323_v27 = vsel %vm322_vm6, %v319_v26, %v321_v25  ;;  %v324_v28 = vsel %vm322_vm6, %v321_v25, %v319_v26  ;;  %400 = vmatprep.mubr.f32.mxu1 %v1209_v0 }
  0x9e   : > { %1046 = vmatprep.subr.msk.mxu1 %vm162_vm2, %v324_v28  ;;  %764 = vmatprep.mubr.f32.mxu0 %v1209_v0 }
  0x9f   : > { %1047 = vmatpush1.msk.msra.mxu1 %vm162_vm2, %v323_v27 }
  0xa0   : > { %v776_v29 = vpop.permute.xlu1 %775  ;;  %v774_v30 = vpop.permute.xlu0 %773 }
  0xa1   : > { %v779_v31 = vsel %vm777_vm7, %v776_v29, %v774_v30  ;;  %v778_v34 = vsel %vm777_vm7, %v774_v30, %v776_v29 }
  0xa2   : > { %1066 = vmatprep.subr.msk.mxu0 %vm162_vm2, %v779_v31 }
  0xa4   : > { %1048 = vmatmul.mubr.msk.f32.vlgmr.msra.gmra.mrb[0].mxu1 %vm158_vm3, %v1045_v32  ;;  %1064 = vmatmul.mubr.msk.f32.vlgmr.msra.gmra.mrb[0].mxu0 %vm158_vm3, %v1061_v33  ;;  %v412_v35 = vpop.permute.xlu1 %411  ;;  %v410_v36 = vpop.permute.xlu0 %409 }
  0xa5   : > { %1067 = vmatpush1.msk.msra.mxu0 %vm162_vm2, %v778_v34  ;;  %v414_v37 = vsel %vm413_vm8, %v410_v36, %v412_v35  ;;  %v415_v38 = vsel %vm413_vm8, %v412_v35, %v410_v36  ;;  %491 = vmatprep.mubr.f32.mxu1 %v1209_v0 }
  0xa6   : > { %1050 = vmatprep.subr.msk.mxu1 %vm162_vm2, %v415_v38  ;;  %855 = vmatprep.mubr.f32.mxu0 %v1209_v0 }
  0xa7   : > { %1051 = vmatpush1.msk.msra.mxu1 %vm162_vm2, %v414_v37 }
  0xa8   : > { %v867_v39 = vpop.permute.xlu1 %866  ;;  %v865_v40 = vpop.permute.xlu0 %864 }
  0xa9   : > { %v870_v41 = vsel %vm868_vm9, %v867_v39, %v865_v40  ;;  %v869_v44 = vsel %vm868_vm9, %v865_v40, %v867_v39 }
  0xaa   : > { %1070 = vmatprep.subr.msk.mxu0 %vm162_vm2, %v870_v41 }
  0xac   : > { %1052 = vmatmul.mubr.msk.f32.vlgmr.msra.gmra.mrb[0].mxu1 %vm158_vm3, %v1049_v42  ;;  %1068 = vmatmul.mubr.msk.f32.vlgmr.msra.gmra.mrb[0].mxu0 %vm158_vm3, %v1065_v43 }
  0xad   : > { %1071 = vmatpush1.msk.msra.mxu0 %vm162_vm2, %v869_v44  ;;  %946 = vmatprep.mubr.f32.mxu0 %v1209_v0 }
  0xb4   : > { %1072 = vmatmul.mubr.msk.f32.vlgmr.msra.gmra.mrb[0].mxu0 %vm158_vm3, %v1069_v45 }
 0x17f   : > { %v493_v46 = vpop.f32.mrb[0].mxu1 }
 0x180   : > { %v495_v47 = vpop.f32.mrb[1].mxu1 }
 0x187   : > { %v948_v48 = vpop.f32.mrb[0].mxu0 }
 0x188   : > { %v1080_v49 = vadd.f32 %v948_v48, %v493_v46  ;;  %v950_v50 = vpop.f32.mrb[1].mxu0 }
 0x189   : > { %v1081_v51 = vadd.f32 %v950_v50, %v495_v47 }
 0x18a   : > { %955 = vst [vmem:[%s136_s8] sm:$0xff] %v1080_v49 }
 0x18b   : > { %956 = vst [vmem:[%s136_s8 + $0x8] sm:$0xff] %v1081_v51 }
 0x18c   : > { %1158 = shalt.err (!%p1155_p3)
}
 0x18d   : > { %s1159_s26 = scalar_lea.hbm %s1365_s21, 256  ;;  %s1163_s29 = scalar_lea.hbm %s1409_s2, 512 }
 0x18e   : > { %p1160_p4 = scmp.ne.s32.totalorder %s1365_s21, %s1159_s26  ;;  %p1164_p9 = scmp.lt.u32.totalorder %s1365_s21, %s1409_s2 }
 0x18f   : > { %p1165_p10 = scmp.lt.u32.totalorder %s1163_s29, %s1159_s26  ;;  %p1167_p12 = scmp.lt.u32.totalorder %s1159_s26, %s1365_s21 }
 0x190   : > { %p1161_p7 = pnand %p1160_p4, %p1272_p5 }
 0x191   : > { %p1166_p11 = por %p1165_p10, %p1164_p9 }
 0x192   : > { %p1162_p8 = pneg %p1161_p7 }
 0x193   : > { %p1168_p13 = por %p1167_p12, %p1166_p11 }
 0x195   : > { %p1169_p0 = pnand %p1168_p13, %p1162_p8 }
 0x197   : > { %1172 = shalt.err (!%p1169_p0)
}
 0x198   : > { %1096 = dma.vmem_to_hbm [thread:$0]  (%p1272_p5), %s1367_s14, 256, %s1365_s21, %s958_s22  }
 0x199 PF: > { %p1102_p1 = scmp.ge.s32.totalorder %s1207_s12, 2  ;;  %s984_s4 = sand.u32 1, %s1195_s9  }
 0x19a   : > { %s985_s5 = scalar_lea.sflag [#allocation3], %s984_s4 }
 0x19b   : > { %p1099_p2 = pnand %p1102_p1, %p1276_p6 }
 0x19d   : > { %1190 = dma.done.wait (!%p1099_p2), %s985_s5, 256  }
 0x19e   : > { %1192 = vsyncadd (!%p1099_p2), %s985_s5, 4294967040  ;;  %p12_p3 = scmp.ge.s32.totalorder %s1259_s15, 4   ;;  %s1412_s9 = smov %s1199_s10 }
 0x19f   : > { %s1413_s10 = smov %s1203_s11  ;;  %s1414_s11 = smov %s1270_s18 }
 0x1a0   : > { %s1415_s12 = smov %s1259_s15  ;;  %14 = sbr.rel (!%p12_p3) target bundleno = 3 (0x3), region = 71 }
 0x1a7   :  { %990 = vsyncpa [#allocation3], 1 }
 0x1a8   :  { %992 = vsyncpa [#allocation3 + $0x1], 1 }

</bundles_post_ra>
